<compile_context>
chip_gen: v5e
topology: v5e:2x2
jax: 0.10.0
libtpu: 0.0.40
codegen_flags: <defaults>
</compile_context>

<pallas_src>
import jax
import jax.numpy as jnp
from jax.experimental import pallas as pl
from jax.experimental.pallas import tpu as pltpu

# ---- small, consistent shapes ----
N, CIN, H, W = 2, 2, 9, 9          # input  (N, CIN, H, W)
COUT = 3                           # conv out channels per branch
KH = KW = 2                        # conv kernel
HP, WP = H - KH + 1, W - KW + 1    # conv output spatial: 8, 8
F = 4                              # Linear out features (Linear(WP, 4))
NBR = 2                            # two branches
NGROUP = 5                         # concat groups: a, relu(b), relu(a), b, relu(a)
NCH_OUT = NGROUP * COUT            # 15 output channels
KP = CIN * KH * KW                 # 8   im2col contraction length
NPIX = N * HP * WP                 # 128 im2col columns (exactly one vreg of lanes)
NH = N * HP                        # 16


def fused_kernel(patches_ref, cw_ref, cb_ref, bw1_ref, lb1_ref,
                 bw2_ref, lb2_ref, out_ref):
    # Conv for BOTH branches and all 3 channels: one (6,8) x (8,128) matmul.
    # rows = (branch, co), cols = (n, hp, wp).
    conv = jnp.dot(cw_ref[...], patches_ref[...],
                   preferred_element_type=jnp.float32) + cb_ref[...]      # (6, 128)

    # Linear along the wp axis as ONE matmul per branch against the
    # block-diagonal (128, 64) weight built in the wrapper.
    # result cols = (n, hp, f); bias added once per branch.
    a_lin = jnp.dot(conv[:COUT], bw1_ref[...],
                    preferred_element_type=jnp.float32) + lb1_ref[...]    # (3, 64)
    b_lin = jnp.dot(conv[COUT:], bw2_ref[...],
                    preferred_element_type=jnp.float32) + lb2_ref[...]    # (3, 64)

    ra = jnp.maximum(a_lin, 0.0)
    rb = jnp.maximum(b_lin, 0.0)

    # torch.cat((a, relu(b), relu(a), b, relu(a)), dim=1):
    # rows of the output slab are exactly the concatenated output channels.
    out_ref[...] = jnp.concatenate([a_lin, rb, ra, b_lin, ra], axis=0)    # (15, 64)


def _im2col(x):
    """(N, CIN, H, W) -> (CIN*KH*KW, N*HP*WP) = (8, 128), f32, lane-dense."""
    cols = []
    for ci in range(CIN):
        for ki in range(KH):
            for kj in range(KW):
                cols.append(x[:, ci, ki:ki + HP, kj:kj + WP].reshape(-1))
    return jnp.stack(cols, axis=0)


@jax.jit
def model_forward(x, cw1, cb1, lwt1, lb1, cw2, cb2, lwt2, lb2):
    patches = _im2col(x)                                            # (8, 128)
    cw = jnp.concatenate([cw1.reshape(COUT, KP),
                          cw2.reshape(COUT, KP)], axis=0)           # (6, 8)
    cb = jnp.concatenate([cb1, cb2]).reshape(NBR * COUT, 1)         # (6, 1)
    # Block-diagonal Linear weights: [(n,hp,wp) x (n,hp,f)] with lwt on the
    # diagonal blocks -> one matmul applies the Linear to every (n,hp) row.
    eye = jnp.eye(NH, dtype=jnp.float32)
    bw1 = jnp.kron(eye, lwt1)                                       # (128, 64)
    bw2 = jnp.kron(eye, lwt2)                                       # (128, 64)
    lb1_t = jnp.tile(lb1.reshape(1, F), (1, NH))                    # (1, 64)
    lb2_t = jnp.tile(lb2.reshape(1, F), (1, NH))                    # (1, 64)

    vmem = pl.BlockSpec(memory_space=pltpu.MemorySpace.VMEM)
    out_k = pl.pallas_call(
        fused_kernel,
        out_shape=jax.ShapeDtypeStruct((NCH_OUT, NH * F), jnp.float32),
        in_specs=[vmem] * 7,
        out_specs=vmem,
        cost_estimate=pl.CostEstimate(
            flops=2 * (NBR * COUT * KP * NPIX + NBR * COUT * NPIX * NH * F),
            transcendentals=0,
            bytes_accessed=4 * (KP * NPIX + NBR * COUT * (KP + 1)
                                + 2 * NPIX * NH * F + 2 * NH * F
                                + NCH_OUT * NH * F)),
    )(patches, cw, cb, bw1, lb1_t, bw2, lb2_t)

    # kernel layout (c, n, hp, f) -> NCHW-style (N, 15, HP, F)
    return out_k.reshape(NCH_OUT, N, HP, F).transpose(1, 0, 2, 3)


def reference_forward(x, cw1, cb1, lwt1, lb1, cw2, cb2, lwt2, lb2):
    """Pure-JAX reference mirroring the PyTorch forward."""
    def branch(cw, cb, lwt, lb):
        conv = jax.lax.conv_general_dilated(
            x, cw, window_strides=(1, 1), padding="VALID",
            dimension_numbers=("NCHW", "OIHW", "NCHW"))
        conv = conv + cb[None, :, None, None]
        return jnp.einsum("nchw,wf->nchf", conv, lwt) + lb.reshape(1, 1, 1, F)
    a = branch(cw1, cb1, lwt1, lb1)
    b = branch(cw2, cb2, lwt2, lb2)
    return jnp.concatenate(
        [a, jax.nn.relu(b), jax.nn.relu(a), b, jax.nn.relu(a)], axis=1)


if __name__ == "__main__":
    key = jax.random.PRNGKey(0)
    ks = jax.random.split(key, 9)

    x = jax.random.normal(ks[0], (N, CIN, H, W), dtype=jnp.float32)

    # branch1 parameters
    cw1 = 0.3 * jax.random.normal(ks[1], (COUT, CIN, KH, KW), dtype=jnp.float32)
    cb1 = 0.1 * jax.random.normal(ks[2], (COUT,), dtype=jnp.float32)
    lwt1 = 0.3 * jax.random.normal(ks[3], (WP, F), dtype=jnp.float32)   # Linear weight, transposed
    lb1 = 0.1 * jax.random.normal(ks[4], (1, F), dtype=jnp.float32)

    # branch2 parameters
    cw2 = 0.3 * jax.random.normal(ks[5], (COUT, CIN, KH, KW), dtype=jnp.float32)
    cb2 = 0.1 * jax.random.normal(ks[6], (COUT,), dtype=jnp.float32)
    lwt2 = 0.3 * jax.random.normal(ks[7], (WP, F), dtype=jnp.float32)
    lb2 = 0.1 * jax.random.normal(ks[8], (1, F), dtype=jnp.float32)

    out = model_forward(x, cw1, cb1, lwt1, lb1, cw2, cb2, lwt2, lb2)
    out = jax.block_until_ready(out)

    ref = reference_forward(x, cw1, cb1, lwt1, lb1, cw2, cb2, lwt2, lb2)
    ref = jax.block_until_ready(ref)

    assert out.shape == (N, NCH_OUT, HP, F), out.shape
    max_diff = float(jnp.max(jnp.abs(out - ref)))
    if max_diff > 1e-3:
        raise AssertionError(f"mismatch vs reference, max |diff| = {max_diff}")

    print("KERNEL_OK")
</pallas_src>

<mosaic_0001>
module attributes {stable_mosaic.version = 11 : i64} {
  func.func @fused_kernel(%arg0: memref<8x128xf32, #tpu.memory_space<vmem>>, %arg1: memref<6x8xf32, #tpu.memory_space<vmem>>, %arg2: memref<6x1xf32, #tpu.memory_space<vmem>>, %arg3: memref<128x64xf32, #tpu.memory_space<vmem>>, %arg4: memref<1x64xf32, #tpu.memory_space<vmem>>, %arg5: memref<128x64xf32, #tpu.memory_space<vmem>>, %arg6: memref<1x64xf32, #tpu.memory_space<vmem>>, %arg7: memref<15x64xf32, #tpu.memory_space<vmem>>) attributes {dimension_semantics = [], scalar_prefetch = 0 : i64, scratch_operands = 0 : i64, tpu.core_type = #tpu.core_type<tc>} {
    %c0 = arith.constant 0 : index
    %c0_0 = arith.constant 0 : index
    %0 = vector.load %arg1[%c0, %c0_0] : memref<6x8xf32, #tpu.memory_space<vmem>>, vector<6x8xf32>
    %c0_1 = arith.constant 0 : index
    %c0_2 = arith.constant 0 : index
    %1 = vector.load %arg0[%c0_1, %c0_2] : memref<8x128xf32, #tpu.memory_space<vmem>>, vector<8x128xf32>
    %cst = arith.constant dense<0.000000e+00> : vector<6x128xf32>
    %2 = tpu.matmul %0, %1, %cst {dimension_numbers = #tpu.dot_dimension_numbers<[1], [0], [0], [1], [0, 0, 1, 1], [], []>} : vector<6x8xf32>, vector<8x128xf32>, vector<6x128xf32> -> vector<6x128xf32>
    %c0_3 = arith.constant 0 : index
    %c0_4 = arith.constant 0 : index
    %3 = vector.load %arg2[%c0_3, %c0_4] : memref<6x1xf32, #tpu.memory_space<vmem>>, vector<6x1xf32>
    %4 = vector.broadcast %3 : vector<6x1xf32> to vector<6x128xf32>
    %5 = arith.addf %2, %4 : vector<6x128xf32>
    %6 = vector.extract_strided_slice %5 {offsets = [0, 0], sizes = [3, 128], strides = [1, 1]} : vector<6x128xf32> to vector<3x128xf32>
    %c0_5 = arith.constant 0 : index
    %c0_6 = arith.constant 0 : index
    %7 = vector.load %arg3[%c0_5, %c0_6] : memref<128x64xf32, #tpu.memory_space<vmem>>, vector<128x64xf32>
    %cst_7 = arith.constant dense<0.000000e+00> : vector<3x64xf32>
    %8 = tpu.matmul %6, %7, %cst_7 {dimension_numbers = #tpu.dot_dimension_numbers<[1], [0], [0], [1], [0, 0, 1, 1], [], []>} : vector<3x128xf32>, vector<128x64xf32>, vector<3x64xf32> -> vector<3x64xf32>
    %c0_8 = arith.constant 0 : index
    %c0_9 = arith.constant 0 : index
    %9 = vector.load %arg4[%c0_8, %c0_9] : memref<1x64xf32, #tpu.memory_space<vmem>>, vector<1x64xf32>
    %10 = vector.broadcast %9 : vector<1x64xf32> to vector<3x64xf32>
    %11 = arith.addf %8, %10 : vector<3x64xf32>
    %12 = vector.extract_strided_slice %5 {offsets = [3, 0], sizes = [3, 128], strides = [1, 1]} : vector<6x128xf32> to vector<3x128xf32>
    %c0_10 = arith.constant 0 : index
    %c0_11 = arith.constant 0 : index
    %13 = vector.load %arg5[%c0_10, %c0_11] : memref<128x64xf32, #tpu.memory_space<vmem>>, vector<128x64xf32>
    %cst_12 = arith.constant dense<0.000000e+00> : vector<3x64xf32>
    %14 = tpu.matmul %12, %13, %cst_12 {dimension_numbers = #tpu.dot_dimension_numbers<[1], [0], [0], [1], [0, 0, 1, 1], [], []>} : vector<3x128xf32>, vector<128x64xf32>, vector<3x64xf32> -> vector<3x64xf32>
    %c0_13 = arith.constant 0 : index
    %c0_14 = arith.constant 0 : index
    %15 = vector.load %arg6[%c0_13, %c0_14] : memref<1x64xf32, #tpu.memory_space<vmem>>, vector<1x64xf32>
    %16 = vector.broadcast %15 : vector<1x64xf32> to vector<3x64xf32>
    %17 = arith.addf %14, %16 : vector<3x64xf32>
    %cst_15 = arith.constant 0.000000e+00 : f32
    %18 = vector.broadcast %cst_15 : f32 to vector<3x64xf32>
    %19 = arith.maximumf %11, %18 : vector<3x64xf32>
    %cst_16 = arith.constant 0.000000e+00 : f32
    %20 = vector.broadcast %cst_16 : f32 to vector<3x64xf32>
    %21 = arith.maximumf %17, %20 : vector<3x64xf32>
    %22 = tpu.concatenate %11, %21, %19, %17, %19 in 0 : vector<3x64xf32>, vector<3x64xf32>, vector<3x64xf32>, vector<3x64xf32>, vector<3x64xf32> -> vector<15x64xf32>
    %c0_17 = arith.constant 0 : index
    %c0_18 = arith.constant 0 : index
    %23 = vector.load %arg7[%c0_17, %c0_18] : memref<15x64xf32, #tpu.memory_space<vmem>>, vector<15x64xf32>
    tpu.vector_store %arg7[%c0_17, %c0_18], %22 {strides = array<i32>} : memref<15x64xf32, #tpu.memory_space<vmem>>, vector<15x64xf32>,
    return
  }
}

</mosaic_0001>

<bundles_post_ra>
// kernel: squeeze.10
= control target key start
LH: loop header
LB: loop body
LE: loop exit
PB: predicated region body
PF: predicated region fallthrough
CT: control target
= control target key end

     0   :  { %s131_s10 = smov 120   ;;  %s132_s11 = smov 104   ;;  %vm3_vm0 = vcmask 64512   ;;  %vm9_vm1 = vcmask 1048512   ;;  %vm15_vm2 = vcmask 982912   ;;  %vm21_vm3 = vcmask 917312   ;;  %s207_s0 = inlined_call_operand.vmem [shape: f32[2,8,8], index: 0, kind: input, shape index: {}]   ;;  %s208_s1 = inlined_call_operand.vmem [shape: f32[1,128], index: 1, kind: output, shape index: {}]  }
   0x1   :  { %v101_v0 = vld [vmem:[%s207_s0 + $0xf] sm:$0x1]   ;;  %v103_v1 = vld [vmem:[%s207_s0 + $0xd] sm:$0x1]   ;;  %v105_v2 = vld [vmem:[%s207_s0 + $0xb] sm:$0x1]  }
   0x2   :  { %7 = vrot.lane.b32.xlu0 %v101_v0, %s131_s10  ;;  %19 = vrot.lane.b32.xlu1 %v103_v1, %s132_s11  ;;  %s133_s14 = smov 88   ;;  %v102_v3 = vld [vmem:[%s207_s0 + $0xe] sm:$0x1]   ;;  %v104_v4 = vld [vmem:[%s207_s0 + $0xc] sm:$0x1]   ;;  %s134_s19 = smov 112  }
   0x3   :  { %31 = vrot.lane.b32.xlu2 %v105_v2, %s133_s14  ;;  %s135_s20 = smov 96   ;;  %v106_v5 = vld [vmem:[%s207_s0 + $0xa] sm:$0x1]   ;;  %s136_s23 = smov 80   ;;  %v107_v6 = vld [vmem:[%s207_s0 + $0x9] sm:$0x1]  }
   0x4   :  { %v108_v7 = vld [vmem:[%s207_s0 + $0x8] sm:$0x1]   ;;  %s137_s28 = smov 72   ;;  %s138_s29 = smov 64   ;;  %v109_v8 = vld [vmem:[%s207_s0 + $0x7] sm:$0x1]  }
   0x5   :  { %s139_s3 = smov 56   ;;  %v110_v9 = vld [vmem:[%s207_s0 + $0x6] sm:$0x1]   ;;  %v111_v10 = vld [vmem:[%s207_s0 + $0x5] sm:$0x1]   ;;  %s140_s8 = smov 48  }
   0x6   :  { %s141_s9 = smov 40   ;;  %v112_v11 = vld [vmem:[%s207_s0 + $0x4] sm:$0x1]   ;;  %s142_s12 = smov 32   ;;  %v113_v12 = vld [vmem:[%s207_s0 + $0x3] sm:$0x1]  }
   0x7   :  { %v114_v13 = vld [vmem:[%s207_s0 + $0x2] sm:$0x1]   ;;  %s143_s17 = smov 24   ;;  %s144_s18 = smov 16   ;;  %v115_v14 = vld [vmem:[%s207_s0 + $0x1] sm:$0x1]  }
   0x8   :  { %s145_s21 = smov 8   ;;  %v2_v15 = vld [vmem:[%s207_s0] sm:$0x1]   ;;  %vm27_vm4 = vcmask 851712   ;;  %vm33_vm5 = vcmask 786112   ;;  %vm39_vm6 = vcmask 720512  }
   0x9   :  { %4 = vst.msk [vmem:[#allocation0] sm:$0x1] %vm3_vm0, %v2_v15   ;;  %vm45_vm7 = vcmask 654912   ;;  %vm51_vm8 = vcmask 589312   ;;  %vm57_vm9 = vcmask 523712   ;;  %vm63_vm10 = vcmask 458112  }
   0xa   :  { %13 = vrot.lane.b32.xlu0 %v102_v3, %s134_s19  ;;  %25 = vrot.lane.b32.xlu1 %v104_v4, %s135_s20  ;;  %vm69_vm11 = vcmask 392512   ;;  %vm75_vm12 = vcmask 326912   ;;  %vm81_vm13 = vcmask 261312   ;;  %vm87_vm14 = vcmask 195712  }
   0xb   :  { %37 = vrot.lane.b32.xlu2 %v106_v5, %s136_s23  ;;  %vm93_vm15 = vcmask 130112  }
  0x12   :  { %43 = vrot.lane.b32.xlu0 %v107_v6, %s137_s28  ;;  %49 = vrot.lane.b32.xlu1 %v108_v7, %s138_s29 }
  0x13   :  { %55 = vrot.lane.b32.xlu2 %v109_v8, %s139_s3 }
  0x1a   :  { %61 = vrot.lane.b32.xlu0 %v110_v9, %s140_s8  ;;  %67 = vrot.lane.b32.xlu1 %v111_v10, %s141_s9 }
  0x1b   :  { %73 = vrot.lane.b32.xlu2 %v112_v11, %s142_s12 }
  0x22   :  { %79 = vrot.lane.b32.xlu0 %v113_v12, %s143_s17  ;;  %85 = vrot.lane.b32.xlu1 %v114_v13, %s144_s18 }
  0x23   :  { %91 = vrot.lane.b32.xlu2 %v115_v14, %s145_s21 }
  0x5d   :  { %v32_v16 = vpop.permute.xlu2 %31  }
  0x65   :  { %v38_v17 = vpop.permute.xlu2 %37  }
  0x6d   :  { %v56_v18 = vpop.permute.xlu2 %55  }
  0x74   :  { %v8_v19 = vpop.permute.xlu0 %7   ;;  %v20_v20 = vpop.permute.xlu1 %19  }
  0x75   :  { %10 = vst.msk [vmem:[#allocation0] sm:$0x1] %vm9_vm1, %v8_v19   ;;  %v74_v21 = vpop.permute.xlu2 %73  }
  0x7c   :  { %v14_v22 = vpop.permute.xlu0 %13   ;;  %v26_v23 = vpop.permute.xlu1 %25  }
  0x7d   :  { %16 = vst.msk [vmem:[#allocation0] sm:$0x1] %vm15_vm2, %v14_v22   ;;  %v92_v24 = vpop.permute.xlu2 %91  }
  0x7e   :  { %22 = vst.msk [vmem:[#allocation0] sm:$0x1] %vm21_vm3, %v20_v20  }
  0x7f   :  { %28 = vst.msk [vmem:[#allocation0] sm:$0x1] %vm27_vm4, %v26_v23  }
  0x80   :  { %34 = vst.msk [vmem:[#allocation0] sm:$0x1] %vm33_vm5, %v32_v16  }
  0x81   :  { %40 = vst.msk [vmem:[#allocation0] sm:$0x1] %vm39_vm6, %v38_v17  }
  0x84   :  { %v44_v25 = vpop.permute.xlu0 %43   ;;  %v50_v26 = vpop.permute.xlu1 %49  }
  0x85   :  { %46 = vst.msk [vmem:[#allocation0] sm:$0x1] %vm45_vm7, %v44_v25  }
  0x86   :  { %52 = vst.msk [vmem:[#allocation0] sm:$0x1] %vm51_vm8, %v50_v26  }
  0x87   :  { %58 = vst.msk [vmem:[#allocation0] sm:$0x1] %vm57_vm9, %v56_v18  }
  0x8c   :  { %v62_v27 = vpop.permute.xlu0 %61   ;;  %v68_v28 = vpop.permute.xlu1 %67  }
  0x8d   :  { %64 = vst.msk [vmem:[#allocation0] sm:$0x1] %vm63_vm10, %v62_v27  }
  0x8e   :  { %70 = vst.msk [vmem:[#allocation0] sm:$0x1] %vm69_vm11, %v68_v28  }
  0x8f   :  { %76 = vst.msk [vmem:[#allocation0] sm:$0x1] %vm75_vm12, %v74_v21  }
  0x94   :  { %v80_v29 = vpop.permute.xlu0 %79   ;;  %v86_v30 = vpop.permute.xlu1 %85  }
  0x95   :  { %82 = vst.msk [vmem:[#allocation0] sm:$0x1] %vm81_vm13, %v80_v29  }
  0x96   :  { %88 = vst.msk [vmem:[#allocation0] sm:$0x1] %vm87_vm14, %v86_v30  }
  0x97   :  { %94 = vst.msk [vmem:[#allocation0] sm:$0x1] %vm93_vm15, %v92_v24  }
  0x9e   :  { %v97_v31 = vld [vmem:[#allocation0] sm:$0x1] }
  0x9f   :  { %100 = vst [vmem:[%s208_s1] sm:$0x1] %v97_v31 }

// kernel: model_forward.1
= control target key start
LH: loop header
LB: loop body
LE: loop exit
PB: predicated region body
PF: predicated region fallthrough
CT: control target
= control target key end

     0   :  { %vm34_vm0 = vcmask 64512   ;;  %v175_v2 = vmov 0   ;;  %vm158_vm1 = vcmask 1040384   ;;  %vm160_vm2 = vcmask 1043456   ;;  %s333_s0 = inlined_call_operand.vmem [shape: f32[8,128], index: 0, kind: input, shape index: {}]   ;;  %s334_s1 = inlined_call_operand.vmem [shape: f32[6,8], index: 1, kind: input, shape index: {}]   ;;  %s335_s2 = inlined_call_operand.vmem [shape: f32[6,1], index: 2, kind: input, shape index: {}]   ;;  %s336_s3 = inlined_call_operand.vmem [shape: f32[128,64], index: 3, kind: input, shape index: {}]   ;;  %s337_s5 = inlined_call_operand.vmem [shape: f32[128,64], index: 5, kind: input, shape index: {}]   ;;  %s338_s4 = inlined_call_operand.vmem [shape: f32[1,64], index: 4, kind: input, shape index: {}]   ;;  %s339_s6 = inlined_call_operand.vmem [shape: f32[1,64], index: 6, kind: input, shape index: {}]   ;;  %s340_s7 = inlined_call_operand.vmem [shape: f32[15,64], index: 7, kind: output, shape index: {}]  }
   0x1   :  { %v27_v0 = vld [vmem:[%s333_s0] sm:$0xff]  ;;  %172 = vset.pattern.permute.xlu0 %v175_v2  ;;  %v73_v4 = vld [vmem:[%s336_s3 + $0x78] sm:$0xff]  ;;  %v72_v5 = vld [vmem:[%s336_s3 + $0x70] sm:$0xff]  ;;  %vm154_vm3 = vcmask 1042432   ;;  %vm164_vm4 = vcmask 522240   ;;  %vm156_vm5 = vcmask 1045504  }
   0x2   :  { %v26_v1 = vld [vmem:[%s334_s1] sm:$0x3f]  ;;  %53 = vmatpush.msra.mxu0 %v27_v0  ;;  %v113_v6 = vld [vmem:[%s337_s5 + $0x78] sm:$0xff]  ;;  %78 = vmatpush.msra.mxu1 %v73_v4  ;;  %v112_v7 = vld [vmem:[%s337_s5 + $0x70] sm:$0xff]  ;;  %vm162_vm6 = vcmask 523264  }
   0x3   :  { %v28_v3 = vld [vmem:[%s335_s2] sm:$0x3f]  ;;  %170 = vmatmul.msk.f32.vlgmr.msra.gmra.mxu0 %vm34_vm0, %v26_v1  ;;  %121 = vmatpush.msra.mxu2 %v113_v6  ;;  %v71_v8 = vld [vmem:[%s336_s3 + $0x68] sm:$0xff]  ;;  %v69_v12 = vld [vmem:[%s336_s3 + $0x58] sm:$0xff] }
   0x4   :  { %31 = vperm.xlu0 %172, %v28_v3   ;;  %79 = vmatpush.msra.mxu1 %v72_v5  ;;  %v111_v9 = vld [vmem:[%s337_s5 + $0x68] sm:$0xff]  ;;  %v70_v10 = vld [vmem:[%s336_s3 + $0x60] sm:$0xff]  ;;  %v109_v13 = vld [vmem:[%s337_s5 + $0x58] sm:$0xff] }
   0x5   :  { %122 = vmatpush.msra.mxu2 %v112_v7  ;;  %v110_v11 = vld [vmem:[%s337_s5 + $0x60] sm:$0xff]  ;;  %v68_v14 = vld [vmem:[%s336_s3 + $0x50] sm:$0xff]  ;;  %v67_v16 = vld [vmem:[%s336_s3 + $0x48] sm:$0xff] }
   0x6   :  { %80 = vmatpush.msra.mxu1 %v71_v8  ;;  %v108_v15 = vld [vmem:[%s337_s5 + $0x50] sm:$0xff]  ;;  %v107_v17 = vld [vmem:[%s337_s5 + $0x48] sm:$0xff]  ;;  %v66_v18 = vld [vmem:[%s336_s3 + $0x40] sm:$0xff] }
   0x7   :  { %123 = vmatpush.msra.mxu2 %v111_v9  ;;  %v106_v19 = vld [vmem:[%s337_s5 + $0x40] sm:$0xff]  ;;  %v65_v20 = vld [vmem:[%s336_s3 + $0x38] sm:$0xff]  ;;  %v64_v22 = vld [vmem:[%s336_s3 + $0x30] sm:$0xff] }
   0x8   :  { %81 = vmatpush.msra.mxu1 %v70_v10  ;;  %v105_v21 = vld [vmem:[%s337_s5 + $0x38] sm:$0xff]  ;;  %v104_v23 = vld [vmem:[%s337_s5 + $0x30] sm:$0xff]  ;;  %v63_v24 = vld [vmem:[%s336_s3 + $0x28] sm:$0xff] }
   0x9   :  { %124 = vmatpush.msra.mxu2 %v110_v11  ;;  %v103_v25 = vld [vmem:[%s337_s5 + $0x28] sm:$0xff]  ;;  %v62_v26 = vld [vmem:[%s336_s3 + $0x20] sm:$0xff]  ;;  %v61_v28 = vld [vmem:[%s336_s3 + $0x18] sm:$0xff] }
   0xa   :  { %82 = vmatpush.msra.mxu1 %v69_v12  ;;  %v102_v27 = vld [vmem:[%s337_s5 + $0x20] sm:$0xff]  ;;  %v101_v29 = vld [vmem:[%s337_s5 + $0x18] sm:$0xff]  ;;  %v60_v30 = vld [vmem:[%s336_s3 + $0x10] sm:$0xff] }
   0xb   :  { %125 = vmatpush.msra.mxu2 %v109_v13  ;;  %v100_v31 = vld [vmem:[%s337_s5 + $0x10] sm:$0xff]  ;;  %v59_v32 = vld [vmem:[%s336_s3 + $0x8] sm:$0xff]  ;;  %v58_v33 = vld [vmem:[%s336_s3] sm:$0xff] }
   0xc   :  { %83 = vmatpush.msra.mxu1 %v68_v14  ;;  %v99_v34 = vld [vmem:[%s337_s5 + $0x8] sm:$0xff]  ;;  %v98_v35 = vld [vmem:[%s337_s5] sm:$0xff] }
   0xd   :  { %126 = vmatpush.msra.mxu2 %v108_v15  ;;  %v173_v40 = vld [vmem:[%s338_s4] ss:$0 sm:$0xff] }
   0xe   :  { %84 = vmatpush.msra.mxu1 %v67_v16  ;;  %v174_v43 = vld [vmem:[%s339_s6] ss:$0 sm:$0xff] }
   0xf   :  { %127 = vmatpush.msra.mxu2 %v107_v17 }
  0x10   :  { %85 = vmatpush.msra.mxu1 %v66_v18 }
  0x11   :  { %128 = vmatpush.msra.mxu2 %v106_v19 }
  0x12   :  { %86 = vmatpush.msra.mxu1 %v65_v20 }
  0x13   :  { %129 = vmatpush.msra.mxu2 %v105_v21 }
  0x14   :  { %87 = vmatpush.msra.mxu1 %v64_v22 }
  0x15   :  { %130 = vmatpush.msra.mxu2 %v104_v23 }
  0x16   :  { %88 = vmatpush.msra.mxu1 %v63_v24 }
  0x17   :  { %131 = vmatpush.msra.mxu2 %v103_v25 }
  0x18   :  { %89 = vmatpush.msra.mxu1 %v62_v26 }
  0x19   :  { %132 = vmatpush.msra.mxu2 %v102_v27 }
  0x1a   :  { %90 = vmatpush.msra.mxu1 %v61_v28 }
  0x1b   :  { %133 = vmatpush.msra.mxu2 %v101_v29 }
  0x1c   :  { %91 = vmatpush.msra.mxu1 %v60_v30 }
  0x1d   :  { %134 = vmatpush.msra.mxu2 %v100_v31 }
  0x1e   :  { %92 = vmatpush.msra.mxu1 %v59_v32 }
  0x1f   :  { %135 = vmatpush.msra.mxu2 %v99_v34 }
  0x20   :  { %93 = vmatpush.msra.mxu1 %v58_v33 }
  0x21   :  { %136 = vmatpush.msra.mxu2 %v98_v35 }
  0x76   :  { %v32_v36 = vpop.permute.xlu0 %31 }
  0x80   :  { %v55_v37 = vpop.f32.mrf.mxu0 }
  0x81   :  { %v56_v38 = vadd.f32 %v55_v37, %v32_v36 }
  0x83   :  { %94 = vmatmul.f32.vlgmr.msra.gmra.mxu1 %v56_v38  ;;  %v119_v39 = vrot.slane %v56_v38, 3 }
  0x85   :  { %137 = vmatmul.f32.vlgmr.msra.gmra.mxu2 %v119_v39 }
 0x100   :  { %v95_v41 = vpop.f32.mrf.mxu1 }
 0x101   :  { %v96_v42 = vadd.f32 %v173_v40, %v95_v41 }
 0x103   :  { %v141_v44 = vmax.f32 %v96_v42, 0.0 }
 0x105   :  { %v147_v47 = vrot.slane %v141_v44, 2  ;;  %v152_v50 = vrot.slane %v141_v44, 4 }
 0x108   :  { %v138_v45 = vpop.f32.mrf.mxu2 }
 0x109   :  { %v139_v46 = vadd.f32 %v174_v43, %v138_v45 }
 0x10b   :  { %v142_v48 = vmax.f32 %v139_v46, 0.0  ;;  %v150_v49 = vrot.slane %v139_v46, 7 }
 0x10d   :  { %v144_v51 = vrot.slane %v142_v48, 5  ;;  %v159_v52 = vsel %vm158_vm1, %v147_v47, %v150_v49 }
 0x10e   :  { %v161_v53 = vsel %vm160_vm2, %v159_v52, %v152_v50 }
 0x10f   :  { %v155_v54 = vsel %vm154_vm3, %v96_v42, %v144_v51  ;;  %165 = vst.msk [vmem:[%s340_s7 + $0x8] sm:$0x7f] %vm164_vm4, %v161_v53 }
 0x110   :  { %v157_v55 = vsel %vm156_vm5, %v155_v54, %v147_v47 }
 0x111   :  { %163 = vst.msk [vmem:[%s340_s7] sm:$0xff] %vm162_vm6, %v157_v55 }

</bundles_post_ra>
